<compile_context>
chip_gen: v7x
topology: tpu7x:2x2x1
jax: 0.10.0
libtpu: 0.0.40
codegen_flags: <defaults>
</compile_context>

<pallas_src>
import functools

import jax
import jax.numpy as jnp
from jax.experimental import pallas as pl
from jax.experimental.pallas import tpu as pltpu

LANE = 128
VMEM_LIMIT_BYTES = 32 * 1024 * 1024  # safe on v5e/v6e (128 MiB) and v7x (64 MiB)


def _round_up(x, m):
    return (x + m - 1) // m * m


def _compiler_params():
    return pltpu.CompilerParams(
        dimension_semantics=("parallel",),  # M tiles independent -> both v7x cores
        vmem_limit_bytes=VMEM_LIMIT_BYTES,
    )


# ---------------------------------------------------------------------------
# Kernels
# ---------------------------------------------------------------------------
def matmul_act_kernel(p_ref, w_ref, o_ref, *, act):
    """Conv-as-matmul tile (bf16 MXU, f32 acc) + fused activation."""
    y = jnp.dot(p_ref[...], w_ref[...], preferred_element_type=jnp.float32)
    if act == "leaky":
        y = jnp.where(y > 0, y, 0.2 * y)
    elif act == "sigmoid":
        # exp and the (approx) reciprocal both go to the EUP slot.
        y = pl.reciprocal(1.0 + jnp.exp(-y), approx=True)
    o_ref[...] = y.astype(o_ref.dtype)


def matmul_stats_kernel(p_ref, w_ref, y_ref, stats_ref):
    """BN pass 1: conv matmul tile + per-tile channel sum / sum-of-squares."""
    y = jnp.dot(p_ref[...], w_ref[...], preferred_element_type=jnp.float32)
    ssum = jnp.sum(y, axis=0, keepdims=True)        # (1, Cpad)
    ssq = jnp.sum(y * y, axis=0, keepdims=True)     # (1, Cpad)
    stats_ref[...] = jnp.concatenate([ssum, ssq], axis=0)[None]  # (1, 2, Cpad)
    y_ref[...] = y.astype(y_ref.dtype)


def bn_act_kernel(y_ref, scale_ref, shift_ref, o_ref):
    """BN pass 2: y*scale + shift (mean/var/gamma/beta folded) + LeakyReLU."""
    y = y_ref[...].astype(jnp.float32)
    y = y * scale_ref[...] + shift_ref[...]
    o_ref[...] = jnp.where(y > 0, y, 0.2 * y).astype(o_ref.dtype)


# ---------------------------------------------------------------------------
# pallas_call wrappers
# ---------------------------------------------------------------------------
def matmul_act(patches, w_mat, *, act, tm, out_dtype):
    m_pad, k = patches.shape
    _, cpad = w_mat.shape
    kernel = functools.partial(matmul_act_kernel, act=act)
    return pl.pallas_call(
        kernel,
        out_shape=jax.ShapeDtypeStruct((m_pad, cpad), out_dtype),
        grid=(m_pad // tm,),
        in_specs=[
            pl.BlockSpec((tm, k), lambda i: (i, 0)),
            pl.BlockSpec((k, cpad), lambda i: (0, 0)),   # weights stay resident
        ],
        out_specs=pl.BlockSpec((tm, cpad), lambda i: (i, 0)),
        compiler_params=_compiler_params(),
    )(patches, w_mat)


def matmul_stats(patches, w_mat, *, tm, out_dtype):
    m_pad, k = patches.shape
    _, cpad = w_mat.shape
    n_tiles = m_pad // tm
    return pl.pallas_call(
        matmul_stats_kernel,
        out_shape=(
            jax.ShapeDtypeStruct((m_pad, cpad), out_dtype),
            jax.ShapeDtypeStruct((n_tiles, 2, cpad), jnp.float32),
        ),
        grid=(n_tiles,),
        in_specs=[
            pl.BlockSpec((tm, k), lambda i: (i, 0)),
            pl.BlockSpec((k, cpad), lambda i: (0, 0)),
        ],
        out_specs=(
            pl.BlockSpec((tm, cpad), lambda i: (i, 0)),
            pl.BlockSpec((1, 2, cpad), lambda i: (i, 0, 0)),
        ),
        compiler_params=_compiler_params(),
    )(patches, w_mat)


def bn_act(y, scale, shift, *, tm, out_dtype):
    m_pad, cpad = y.shape
    return pl.pallas_call(
        bn_act_kernel,
        out_shape=jax.ShapeDtypeStruct((m_pad, cpad), out_dtype),
        grid=(m_pad // tm,),
        in_specs=[
            pl.BlockSpec((tm, cpad), lambda i: (i, 0)),
            pl.BlockSpec((1, cpad), lambda i: (0, 0)),
            pl.BlockSpec((1, cpad), lambda i: (0, 0)),
        ],
        out_specs=pl.BlockSpec((tm, cpad), lambda i: (i, 0)),
        compiler_params=_compiler_params(),
    )(y, scale, shift)


# ---------------------------------------------------------------------------
# JAX glue (im2col in NHWC, layer wrapper, forward)
# ---------------------------------------------------------------------------
def im2col_nhwc(x, kh, kw, stride, pad):
    """x: (N, H, W, C) -> patches (N*Ho*Wo, kh*kw*C), Ho, Wo. K is contiguous."""
    n, h, w, c = x.shape
    xp = jnp.pad(x, ((0, 0), (pad, pad), (pad, pad), (0, 0)))
    ho = (h + 2 * pad - kh) // stride + 1
    wo = (w + 2 * pad - kw) // stride + 1
    cols = []
    for i in range(kh):
        for j in range(kw):
            cols.append(xp[:, i:i + stride * ho:stride, j:j + stride * wo:stride, :])
    p = jnp.stack(cols, axis=3)                     # (N, Ho, Wo, kh*kw, C)
    return p.reshape(n * ho * wo, kh * kw * c), ho, wo


def conv_bn_act(x, w, gamma, beta, *, stride, pad, use_bn, act, out_dtype):
    """x: (N, H, W, C) NHWC (bf16). w: (Cout, Cin, kh, kw) PyTorch layout (f32)."""
    n = x.shape[0]
    cout, cin, kh, kw = w.shape
    patches, ho, wo = im2col_nhwc(x, kh, kw, stride, pad)
    m, k = patches.shape

    cpad = _round_up(cout, LANE)               # lane-dense (unmasked) stores
    tm = min(512, _round_up(m, 16))            # M tile; zero-pad M to a multiple
    m_pad = _round_up(m, tm)

    patches = jnp.pad(patches, ((0, m_pad - m), (0, 0))).astype(jnp.bfloat16)
    # (Cout, Cin, kh, kw) -> (kh, kw, Cin, Cout) -> (K, Cout_pad); matches patch K order.
    w_mat = jnp.transpose(w, (2, 3, 1, 0)).reshape(k, cout)
    w_mat = jnp.pad(w_mat, ((0, 0), (0, cpad - cout))).astype(jnp.bfloat16)

    if use_bn:
        y, stats = matmul_stats(patches, w_mat, tm=tm, out_dtype=jnp.bfloat16)
        tot = jnp.sum(stats, axis=0)[:, :cout]               # (2, Cout) f32
        mean = tot[0] / float(m)
        var = jnp.maximum(tot[1] / float(m) - mean * mean, 0.0)  # biased (training BN)
        scale = gamma * jax.lax.rsqrt(var + 1e-5)
        shift = beta - mean * scale
        scale = jnp.pad(scale, (0, cpad - cout)).reshape(1, cpad).astype(jnp.float32)
        shift = jnp.pad(shift, (0, cpad - cout)).reshape(1, cpad).astype(jnp.float32)
        y = bn_act(y, scale, shift, tm=tm, out_dtype=out_dtype)
    else:
        y = matmul_act(patches, w_mat, act=act, tm=tm, out_dtype=out_dtype)

    return y[:m, :cout].reshape(n, ho, wo, cout), ho, wo


def init_params(key, nc, ndf):
    """DCGAN-style init: conv ~ N(0, 0.02), BN gamma ~ N(1, 0.02), beta = 0."""
    layer_defs = [  # (cout, cin, k, stride, pad, use_bn, activation)
        (ndf,     nc,      4, 2, 1, False, "leaky"),
        (ndf * 2, ndf,     4, 2, 1, True,  "leaky"),
        (ndf * 4, ndf * 2, 4, 2, 1, True,  "leaky"),
        (ndf * 8, ndf * 4, 4, 2, 1, True,  "leaky"),
        (1,       ndf * 8, 4, 1, 0, False, "sigmoid"),
    ]
    params = []
    for (cout, cin, ksz, stride, pad, use_bn, act) in layer_defs:
        key, kw_, kg_ = jax.random.split(key, 3)
        w = 0.02 * jax.random.normal(kw_, (cout, cin, ksz, ksz), jnp.float32)
        if use_bn:
            gamma = 1.0 + 0.02 * jax.random.normal(kg_, (cout,), jnp.float32)
        else:
            gamma = jnp.ones((cout,), jnp.float32)
        beta = jnp.zeros((cout,), jnp.float32)
        params.append((w, gamma, beta, stride, pad, use_bn, act))
    return params


def discriminator_forward(x_nchw, params):
    """x: (N, nc, 64, 64) NCHW -> (N,) sigmoid scores (like the PyTorch module)."""
    h = jnp.transpose(x_nchw, (0, 2, 3, 1)).astype(jnp.bfloat16)  # NHWC, once
    n_layers = len(params)
    for idx, (w, gamma, beta, stride, pad, use_bn, act) in enumerate(params):
        last = idx == n_layers - 1
        out_dtype = jnp.float32 if last else jnp.bfloat16
        h, _, _ = conv_bn_act(h, w, gamma, beta, stride=stride, pad=pad,
                              use_bn=use_bn, act=act, out_dtype=out_dtype)
    # final shape (N, 1, 1, 1); .view(-1, 1).squeeze(1) == flatten to (N,)
    return h.reshape(-1)


if __name__ == "__main__":
    nc, ndf = 3, 8           # small channels; DCGAN D structurally needs 64x64 input
    key = jax.random.PRNGKey(0)
    kx, kp = jax.random.split(key)
    x = jax.random.normal(kx, (2, nc, 64, 64), jnp.float32)
    params = init_params(kp, nc, ndf)

    out = jax.block_until_ready(discriminator_forward(x, params))
    assert out.shape == (2,), out.shape
    assert bool(jnp.all(jnp.isfinite(out)))
    assert bool(jnp.all((out >= -1e-3) & (out <= 1.0 + 1e-3)))  # sigmoid range (approx recip tol)
    print("KERNEL_OK")
</pallas_src>

<mosaic_0001>
module attributes {stable_mosaic.version = 11 : i64} {
  func.func @matmul_act_kernel(%arg0: i32, %arg1: memref<512x48xbf16, #tpu.memory_space<vmem>>, %arg2: memref<48x128xbf16, #tpu.memory_space<vmem>>, %arg3: memref<512x128xbf16, #tpu.memory_space<vmem>>) attributes {dimension_semantics = [#tpu.dimension_semantics<parallel>], iteration_bounds = array<i64: 4>, scalar_prefetch = 0 : i64, scratch_operands = 0 : i64, tpu.core_type = #tpu.core_type<tc>, window_params = [{transform_indices = @transform_0, window_bounds = array<i64: 512, 48>}, {pipeline_mode = #tpu.pipeline_mode<synchronous>, transform_indices = @transform_1, window_bounds = array<i64: 48, 128>}, {transform_indices = @transform_2, window_bounds = array<i64: 512, 128>}]} {
    %c0 = arith.constant 0 : index
    %c0_0 = arith.constant 0 : index
    %0 = vector.load %arg1[%c0, %c0_0] : memref<512x48xbf16, #tpu.memory_space<vmem>>, vector<512x48xbf16>
    %c0_1 = arith.constant 0 : index
    %c0_2 = arith.constant 0 : index
    %1 = vector.load %arg2[%c0_1, %c0_2] : memref<48x128xbf16, #tpu.memory_space<vmem>>, vector<48x128xbf16>
    %cst = arith.constant dense<0.000000e+00> : vector<512x128xf32>
    %2 = tpu.matmul %0, %1, %cst {dimension_numbers = #tpu.dot_dimension_numbers<[1], [0], [0], [1], [0, 0, 1, 1], [], []>} : vector<512x48xbf16>, vector<48x128xbf16>, vector<512x128xf32> -> vector<512x128xf32>
    %cst_3 = arith.constant 0.000000e+00 : f32
    %3 = vector.broadcast %cst_3 : f32 to vector<512x128xf32>
    %4 = arith.cmpf ogt, %2, %3 : vector<512x128xf32>
    %cst_4 = arith.constant 2.000000e-01 : f32
    %5 = vector.broadcast %cst_4 : f32 to vector<512x128xf32>
    %6 = arith.mulf %5, %2 : vector<512x128xf32>
    %7 = arith.select %4, %2, %6 : vector<512x128xi1>, vector<512x128xf32>
    %8 = arith.truncf %7 : vector<512x128xf32> to vector<512x128xbf16>
    %c0_5 = arith.constant 0 : index
    %c0_6 = arith.constant 0 : index
    %9 = vector.load %arg3[%c0_5, %c0_6] : memref<512x128xbf16, #tpu.memory_space<vmem>>, vector<512x128xbf16>
    tpu.vector_store %arg3[%c0_5, %c0_6], %8 {strides = array<i32>} : memref<512x128xbf16, #tpu.memory_space<vmem>>, vector<512x128xbf16>,
    return
  }
  func.func @transform_0(%arg0: i32) -> (i32, i32) {
    %c0_i32 = arith.constant 0 : i32
    %c0_i32_0 = arith.constant 0 : i32
    return %arg0, %c0_i32 : i32, i32
  }
  func.func @transform_1(%arg0: i32) -> (i32, i32) {
    %c0_i32 = arith.constant 0 : i32
    %c0_i32_0 = arith.constant 0 : i32
    %c0_i32_1 = arith.constant 0 : i32
    return %c0_i32, %c0_i32_0 : i32, i32
  }
  func.func @transform_2(%arg0: i32) -> (i32, i32) {
    %c0_i32 = arith.constant 0 : i32
    %c0_i32_0 = arith.constant 0 : i32
    return %arg0, %c0_i32 : i32, i32
  }
}

</mosaic_0001>

<bundles_post_ra>
// kernel: tpu_custom_call.1
= control target key start
LH: loop header
LB: loop body
LE: loop exit
PB: predicated region body
PF: predicated region fallthrough
CT: control target
= control target key end

     0   :  { %7 = vsyncpa [#allocation3], 0  ;;  %s2261_s0 = inlined_call_operand.vmem [shape: bf16[2048,48], index: 0, kind: input, shape index: {}]   ;;  %s2262_s1 = inlined_call_operand.vmem [shape: bf16[48,128], index: 1, kind: input, shape index: {}]   ;;  %s2263_s2 = inlined_call_operand.hbm [shape: bf16[2048,128], index: 2, kind: output, shape index: {}]  }
   0x1   :  { %9 = vsyncpa [#allocation3 + $0x1], 0  ;;  %s2036_s9 = smov 0   ;;  %s2038_s10 = smov 0  }
   0x2   :  { %s2040_s11 = smov 0   ;;  %s2042_s12 = smov 0  }
   0x3 LB: > { %s2057_s13 = sadd.s32 4294967295, %s2016_s12   ;;  %s1368_s14 = sadd.s32 4294967294, %s2016_s12   ;;  %s2016_s12 = sphi %s2042_s12, %s2269_s12   ;;  %s2012_s11 = sphi %s2040_s11, %s2268_s11   ;;  %s2008_s10 = sphi %s2038_s10, %s2267_s10   ;;  %s2004_s9 = sphi %s2036_s9, %s2266_s9  }
   0x4   : > { %s2061_s15 = sadd.s32 1, %s2016_s12   ;;  %s69_s16 = sadd.s32 1, %s2012_s11 }
   0x5   : > { %s66_s17 = ssub.s32 %s2016_s12, %s2061_s15  ;;  %p79_p0 = scmp.ne.s32.totalorder %s2012_s11, %s2008_s10 }
   0x6   : > { %p67_p1 = scmp.eq.s32.totalorder %s66_s17, 0  ;;  %p80_p2 = scmp.eq.s32.totalorder %s2057_s13, 3 }
   0x7   : > { %p85_p3 = scmp.ne.s32.totalorder %s2008_s10, %s2004_s9  ;;  %p86_p4 = scmp.eq.s32.totalorder %s1368_s14, 3 }
   0x8   : > { %s2072_s18 = scalar_select %p67_p1, %s2012_s11, %s69_s16  }
   0x9   : > { %p2074_p5 = por %p80_p2, %p79_p0  ;;  %p2078_p6 = por %p86_p4, %p85_p3 }
   0xa   : > { %p1371_p7 = scmp.ge.s32.totalorder %s2016_s12, 1  ;;  %p116_p8 = scmp.lt.s32.totalorder %s2016_s12, 5 }
   0xc   : > { %p117_p9 = pnand %p1371_p7, %p116_p8 }
   0xd   : > { %v1919_v0 = vld [vmem:[%s2262_s1] sm:$0xff] (!%p117_p9)   ;;  %s1373_s23 = sshll.u32 (!%p117_p9), %s2057_s13, 6  ;;  %v1920_v1 = vld [vmem:[%s2262_s1 + $0x8] sm:$0xff] (!%p117_p9)   ;;  %v1921_v2 = vld [vmem:[%s2262_s1 + $0x10] sm:$0xff] (!%p117_p9)   ;;  %vm394_vm0 = vcmask (!%p117_p9), 392192   ;;  %s135_s4 = sand.u32 (!%p117_p9), 1, %s2008_s10  }
   0xe   : > { %120 = sbr.rel (%p117_p9) target bundleno = 319 (0x13f), region = 28  ;;  %p139_p10 = scmp.lt.s32.totalorder (!%p117_p9), %s1373_s23, 255  ;;  %1802 = vmatprep.subr.bf16.mxu0 (!%p117_p9), %v1919_v0  ;;  %1872 = vmatprep.subr.bf16.mxu1 (!%p117_p9), %v1919_v0 }
   0xf   : > { %1803 = vmatpush3.bf16.msra.mxu0 (!%p117_p9), %v1919_v0  ;;  %1875 = vmatpush3.bf16.msra.mxu1 (!%p117_p9), %v1919_v0  ;;  %s1372_s5 = sshll.u32 (!%p117_p9), %s135_s4, 8  ;;  %s1575_s7 = sshll.u32 (!%p117_p9), %s2057_s13, 12 }
  0x10   : > { %1804 = vmatprep.subr.bf16.mxu0 (!%p117_p9), %v1920_v1  ;;  %1873 = vmatprep.subr.bf16.mxu1 (!%p117_p9), %v1920_v1  ;;  %s2166_s6 = scalar_lea.vmem (!%p117_p9), [#allocation2], %s1372_s5  ;;  %s2210_s17 = scalar_lea.hbm (!%p117_p9), %s2263_s2, %s1575_s7 }
  0x11   : > { %s1306_s8 = sshll.u32 (!%p117_p9), %s2166_s6, 4  ;;  %s2220_s21 = scalar_lea.sflag (!%p117_p9), [#allocation3], %s135_s4  ;;  %s2212_s8 = int_to_ptr.vmem [resolvable:$true] %s1306_s8 }
  0x12   : > { %s1954_s13 = scalar_lea.vmem (!%p117_p9), %s2212_s8, 4096  ;;  %s2018_s22 = smov (!%p117_p9), [#allocation2]  }
  0x13   : > { %1805 = vmatpush3.bf16.msra.mxu0 (!%p117_p9), %v1920_v1  ;;  %1876 = vmatpush3.bf16.msra.mxu1 (!%p117_p9), %v1920_v1  ;;  %p1955_p11 = scmp.ne.s32.totalorder (!%p117_p9), %s2212_s8, %s1954_s13 }
  0x14   : > { %1806 = vmatprep.subr.bf16.mxu0 (!%p117_p9), %v1921_v2  ;;  %1874 = vmatprep.subr.bf16.mxu1 (!%p117_p9), %v1921_v2 }
  0x15   : > { %s2271_s23 = smov (!%p139_p10, %s1373_s23), 255  ;;  %p1956_p12 = pnand %p1955_p11, %p2074_p5 }
  0x16   : > { %s1374_s28 = sshll.u32 %s2271_s23, 2  ;;  %s1958_s23 = sshll.u32 %s2018_s22, 4  ;;  %s1959_s23 = int_to_ptr.vmem [resolvable:$false] %s1958_s23 }
  0x17   : > { %s2097_s3 = scalar_lea.vmem %s2261_s0, %s1374_s28  ;;  %1807 = vmatpush3.bf16.msra.mxu0 %v1921_v2  ;;  %1877 = vmatpush3.bf16.msra.mxu1 %v1921_v2  ;;  %p1957_p13 = pneg %p1956_p12 }
  0x18   : > { %v1922_v3 = vld [vmem:[%s2097_s3] sm:$0xff]   ;;  %v1924_v5 = vld [vmem:[%s2097_s3 + $0x8] sm:$0xff]   ;;  %v1926_v7 = vld [vmem:[%s2097_s3 + $0x10] sm:$0xff]   ;;  %s1960_s24 = scalar_lea.vmem %s1959_s23, 8192  ;;  %p1961_p0 = scmp.lt.s32.totalorder %s2212_s8, %s1959_s23 }
  0x19   : > { %v1923_v4 = vld [vmem:[%s2097_s3 + $0x80] sm:$0xff]   ;;  %1808 = vmatprep.mubr.msk.bf16.mxu0 %vm394_vm0, %v1922_v3  ;;  %v1925_v6 = vld [vmem:[%s2097_s3 + $0x88] sm:$0xff]   ;;  %v1927_v8 = vld [vmem:[%s2097_s3 + $0x90] sm:$0xff]   ;;  %p1962_p1 = scmp.lt.s32.totalorder %s1960_s24, %s1954_s13 }
  0x1a   : > { %1840 = vmatprep.mubr.msk.bf16.mxu1 %vm394_vm0, %v1923_v4  ;;  %1809 = vmatmul.mubr.msk.bf16.vlgmr.msra.gmra.mrb[0].mxu0 %vm394_vm0, %v1924_v5  ;;  %v1928_v9 = vld [vmem:[%s2097_s3 + $0x18] sm:$0xff]   ;;  %v1930_v11 = vld [vmem:[%s2097_s3 + $0x20] sm:$0xff]   ;;  %v1932_v13 = vld [vmem:[%s2097_s3 + $0x28] sm:$0xff]  }
  0x1b   : > { %1841 = vmatmul.mubr.msk.bf16.vlgmr.msra.gmra.mrb[0].mxu1 %vm394_vm0, %v1925_v6  ;;  %1812 = vmatprep.mubr.msk.bf16.mxu0 %vm394_vm0, %v1926_v7  ;;  %v1929_v10 = vld [vmem:[%s2097_s3 + $0x98] sm:$0xff]   ;;  %v1931_v12 = vld [vmem:[%s2097_s3 + $0xa0] sm:$0xff]   ;;  %v1933_v14 = vld [vmem:[%s2097_s3 + $0xa8] sm:$0xff]   ;;  %p1963_p2 = por %p1962_p1, %p1961_p0 }
  0x1c   : > { %1844 = vmatprep.mubr.msk.bf16.mxu1 %vm394_vm0, %v1927_v8  ;;  %v1934_v15 = vld [vmem:[%s2097_s3 + $0x30] sm:$0xff]   ;;  %v1936_v17 = vld [vmem:[%s2097_s3 + $0x38] sm:$0xff]   ;;  %v1938_v19 = vld [vmem:[%s2097_s3 + $0x40] sm:$0xff]  }
  0x1d   : > { %v1935_v16 = vld [vmem:[%s2097_s3 + $0xb0] sm:$0xff]   ;;  %v1937_v18 = vld [vmem:[%s2097_s3 + $0xb8] sm:$0xff]   ;;  %v1939_v20 = vld [vmem:[%s2097_s3 + $0xc0] sm:$0xff]   ;;  %p1964_p3 = pnand %p1963_p2, %p1957_p13 }
  0x1e   : > { %v1940_v21 = vld [vmem:[%s2097_s3 + $0x48] sm:$0xff]   ;;  %v1942_v23 = vld [vmem:[%s2097_s3 + $0x50] sm:$0xff]   ;;  %v1944_v25 = vld [vmem:[%s2097_s3 + $0x58] sm:$0xff]  }
  0x1f   : > { %v1941_v22 = vld [vmem:[%s2097_s3 + $0xc8] sm:$0xff]   ;;  %v1943_v24 = vld [vmem:[%s2097_s3 + $0xd0] sm:$0xff]   ;;  %v1945_v26 = vld [vmem:[%s2097_s3 + $0xd8] sm:$0xff]  }
  0x20   : > { %v1946_v27 = vld [vmem:[%s2097_s3 + $0x60] sm:$0xff]   ;;  %v1948_v29 = vld [vmem:[%s2097_s3 + $0x68] sm:$0xff]   ;;  %v1950_v31 = vld [vmem:[%s2097_s3 + $0x70] sm:$0xff]  }
  0x21   : > { %v1947_v28 = vld [vmem:[%s2097_s3 + $0xe0] sm:$0xff]   ;;  %v1949_v30 = vld [vmem:[%s2097_s3 + $0xe8] sm:$0xff]   ;;  %v1951_v32 = vld [vmem:[%s2097_s3 + $0xf0] sm:$0xff]  }
  0x22   : > { %1813 = vmatmul.mubr.msk.bf16.gmra.mrb[4].mxu0 %vm394_vm0, %v1928_v9  ;;  %v1952_v33 = vld [vmem:[%s2097_s3 + $0x78] sm:$0xff]  }
  0x23   : > { %1845 = vmatmul.mubr.msk.bf16.gmra.mrb[4].mxu1 %vm394_vm0, %v1929_v10  ;;  %1816 = vmatprep.mubr.msk.bf16.mxu0 %vm394_vm0, %v1930_v11  ;;  %v1953_v34 = vld [vmem:[%s2097_s3 + $0xf8] sm:$0xff]  }
  0x24   : > { %1848 = vmatprep.mubr.msk.bf16.mxu1 %vm394_vm0, %v1931_v12 }
  0x2a   : > { %1817 = vmatmul.mubr.msk.bf16.gmra.mrb[8].mxu0 %vm394_vm0, %v1932_v13 }
  0x2b   : > { %1849 = vmatmul.mubr.msk.bf16.gmra.mrb[8].mxu1 %vm394_vm0, %v1933_v14  ;;  %1820 = vmatprep.mubr.msk.bf16.mxu0 %vm394_vm0, %v1934_v15 }
  0x2c   : > { %1852 = vmatprep.mubr.msk.bf16.mxu1 %vm394_vm0, %v1935_v16 }
  0x32   : > { %1821 = vmatmul.mubr.msk.bf16.gmra.mrb[12].mxu0 %vm394_vm0, %v1936_v17 }
  0x33   : > { %1853 = vmatmul.mubr.msk.bf16.gmra.mrb[12].mxu1 %vm394_vm0, %v1937_v18  ;;  %1824 = vmatprep.mubr.msk.bf16.mxu0 %vm394_vm0, %v1938_v19 }
  0x34   : > { %1856 = vmatprep.mubr.msk.bf16.mxu1 %vm394_vm0, %v1939_v20 }
  0x3a   : > { %1825 = vmatmul.mubr.msk.bf16.gmra.mrb[16].mxu0 %vm394_vm0, %v1940_v21 }
  0x3b   : > { %1857 = vmatmul.mubr.msk.bf16.gmra.mrb[16].mxu1 %vm394_vm0, %v1941_v22  ;;  %1828 = vmatprep.mubr.msk.bf16.mxu0 %vm394_vm0, %v1942_v23 }
  0x3c   : > { %1860 = vmatprep.mubr.msk.bf16.mxu1 %vm394_vm0, %v1943_v24 }
  0x42   : > { %1829 = vmatmul.mubr.msk.bf16.gmra.mrb[20].mxu0 %vm394_vm0, %v1944_v25 }
  0x43   : > { %1861 = vmatmul.mubr.msk.bf16.gmra.mrb[20].mxu1 %vm394_vm0, %v1945_v26  ;;  %1832 = vmatprep.mubr.msk.bf16.mxu0 %vm394_vm0, %v1946_v27 }
  0x44   : > { %1864 = vmatprep.mubr.msk.bf16.mxu1 %vm394_vm0, %v1947_v28 }
  0x4a   : > { %1833 = vmatmul.mubr.msk.bf16.gmra.mrb[24].mxu0 %vm394_vm0, %v1948_v29 }
  0x4b   : > { %1865 = vmatmul.mubr.msk.bf16.gmra.mrb[24].mxu1 %vm394_vm0, %v1949_v30  ;;  %1836 = vmatprep.mubr.msk.bf16.mxu0 %vm394_vm0, %v1950_v31 }
  0x4c   : > { %1868 = vmatprep.mubr.msk.bf16.mxu1 %vm394_vm0, %v1951_v32 }
  0x52   : > { %1837 = vmatmul.mubr.msk.bf16.gmra.mrb[28].mxu0 %vm394_vm0, %v1952_v33 }
  0x53   : > { %1869 = vmatmul.mubr.msk.bf16.gmra.mrb[28].mxu1 %vm394_vm0, %v1953_v34 }
  0xed   : > { %v1810_v35 = vpop.f32.mrb[0].mxu0 }
  0xee   : > { %v1842_v36 = vpop.f32.mrb[0].mxu1  ;;  %vm782_vm1 = vcmp.gt.f32.partialorder %v1810_v35, 0.0  ;;  %v846_v37 = vmul.f32 0.2, %v1810_v35  ;;  %v525_v39 = vpop.f32.mrb[1].mxu0 }
  0xef   : > { %v878_v38 = vmul.f32 0.2, %v1842_v36  ;;  %vm814_vm2 = vcmp.gt.f32.partialorder %v1842_v36, 0.0  ;;  %v653_v40 = vpop.f32.mrb[1].mxu1  ;;  %v844_v41 = vmul.f32 0.2, %v525_v39 }
  0xf0   : > { %v1811_v42 = vpop.f32.mrb[2].mxu0  ;;  %v1843_v43 = vpop.f32.mrb[2].mxu1  ;;  %v910_v44 = vsel %vm782_vm1, %v1810_v35, %v846_v37  ;;  %v876_v45 = vmul.f32 0.2, %v653_v40  ;;  %vm780_vm4 = vcmp.gt.f32.partialorder %v525_v39, 0.0  ;;  %vm812_vm6 = vcmp.gt.f32.partialorder %v653_v40, 0.0 }
  0xf1   : > { %vm783_vm3 = vcmp.gt.f32.partialorder %v1811_v42, 0.0  ;;  %v847_v46 = vmul.f32 0.2, %v1811_v42  ;;  %v942_v47 = vsel %vm814_vm2, %v1842_v36, %v878_v38  ;;  %vm815_vm5 = vcmp.gt.f32.partialorder %v1843_v43, 0.0  ;;  %v528_v49 = vpop.f32.mrb[3].mxu0  ;;  %v656_v50 = vpop.f32.mrb[3].mxu1 }
  0xf2   : > { %v879_v48 = vmul.f32 0.2, %v1843_v43  ;;  %vm781_vm7 = vcmp.gt.f32.partialorder %v528_v49, 0.0  ;;  %v845_v52 = vmul.f32 0.2, %v528_v49  ;;  %vm813_vm8 = vcmp.gt.f32.partialorder %v656_v50, 0.0 }
  0xf3   : > { %v911_v51 = vsel %vm783_vm3, %v1811_v42, %v847_v46  ;;  %v877_v55 = vmul.f32 0.2, %v656_v50  ;;  %v908_v56 = vsel %vm780_vm4, %v525_v39, %v844_v41  ;;  %v940_v61 = vsel %vm812_vm6, %v653_v40, %v876_v45 }
  0xf4   : > { %v1584_v53 = vpack.c.bf16 %v911_v51, %v910_v44  ;;  %v943_v54 = vsel %vm815_vm5, %v1843_v43, %v879_v48  ;;  %v909_v58 = vsel %vm781_vm7, %v528_v49, %v845_v52 }
  0xf5   : > { %v1664_v57 = vpack.c.bf16 %v943_v54, %v942_v47  ;;  %v1814_v59 = vpop.f32.mrb[4].mxu0  ;;  %v1579_v62 = vpack.c.bf16 %v909_v58, %v908_v56  ;;  %v941_v63 = vsel %vm813_vm8, %v656_v50, %v877_v55 }
  0xf6   : > { %v1846_v60 = vpop.f32.mrb[4].mxu1  ;;  %1736 = vst [vmem:[%s2166_s6 + $0x8] sm:$0xff] %v1584_v53   ;;  %v850_v0 = vmul.f32 0.2, %v1814_v59  ;;  %v541_v1 = vpop.f32.mrb[5].mxu0  ;;  %v1659_v3 = vpack.c.bf16 %v941_v63, %v940_v61  ;;  %vm786_vm9 = vcmp.gt.f32.partialorder %v1814_v59, 0.0 }
  0xf7   : > { %v669_v2 = vpop.f32.mrb[5].mxu1  ;;  %1752 = vst [vmem:[%s2166_s6 + $0x88] sm:$0xff] %v1664_v57   ;;  %v882_v4 = vmul.f32 0.2, %v1846_v60  ;;  %v1815_v5 = vpop.f32.mrb[6].mxu0  ;;  %1580 = vst [vmem:[%s2166_s6] sm:$0xff] %v1579_v62   ;;  %vm818_vm10 = vcmp.gt.f32.partialorder %v1846_v60, 0.0 }
  0xf8   : > { %v1847_v6 = vpop.f32.mrb[6].mxu1  ;;  %v848_v7 = vmul.f32 0.2, %v541_v1  ;;  %v880_v8 = vmul.f32 0.2, %v669_v2  ;;  %v544_v9 = vpop.f32.mrb[7].mxu0  ;;  %v914_v12 = vsel %vm786_vm9, %v1814_v59, %v850_v0 }
  0xf9   : > { %1751 = vst [vmem:[%s2166_s6 + $0x80] sm:$0xff] %v1659_v3   ;;  %vm784_vm11 = vcmp.gt.f32.partialorder %v541_v1, 0.0  ;;  %vm787_vm12 = vcmp.gt.f32.partialorder %v1815_v5, 0.0  ;;  %v851_v10 = vmul.f32 0.2, %v1815_v5  ;;  %vm819_vm13 = vcmp.gt.f32.partialorder %v1847_v6, 0.0 }
  0xfa   : > { %v672_v11 = vpop.f32.mrb[7].mxu1  ;;  %vm816_vm14 = vcmp.gt.f32.partialorder %v669_v2, 0.0  ;;  %v883_v13 = vmul.f32 0.2, %v1847_v6  ;;  %vm785_vm15 = vcmp.gt.f32.partialorder %v544_v9, 0.0  ;;  %v946_v17 = vsel %vm818_vm10, %v1846_v60, %v882_v4 }
  0xfb   : > { %v915_v14 = vsel %vm787_vm12, %v1815_v5, %v851_v10  ;;  %v849_v15 = vmul.f32 0.2, %v544_v9  ;;  %vm817_vm0 = vcmp.gt.f32.partialorder %v672_v11, 0.0  ;;  %v881_v16 = vmul.f32 0.2, %v672_v11 }
  0xfc   : > { %v912_v18 = vsel %vm784_vm11, %v541_v1, %v848_v7  ;;  %v1594_v19 = vpack.c.bf16 %v915_v14, %v914_v12  ;;  %v947_v20 = vsel %vm819_vm13, %v1847_v6, %v883_v13  ;;  %v944_v21 = vsel %vm816_vm14, %v669_v2, %v880_v8 }
  0xfd   : > { %v1674_v22 = vpack.c.bf16 %v947_v20, %v946_v17  ;;  %v913_v23 = vsel %vm785_vm15, %v544_v9, %v849_v15  ;;  %v945_v24 = vsel %vm817_vm0, %v672_v11, %v881_v16  ;;  %v1818_v25 = vpop.f32.mrb[8].mxu0 }
  0xfe   : > { %v1850_v26 = vpop.f32.mrb[8].mxu1  ;;  %1738 = vst [vmem:[%s2166_s6 + $0x18] sm:$0xff] %v1594_v19   ;;  %v1589_v27 = vpack.c.bf16 %v913_v23, %v912_v18  ;;  %v1669_v28 = vpack.c.bf16 %v945_v24, %v944_v21  ;;  %vm790_vm1 = vcmp.gt.f32.partialorder %v1818_v25, 0.0  ;;  %v854_v29 = vmul.f32 0.2, %v1818_v25  ;;  %v557_v30 = vpop.f32.mrb[9].mxu0 }
  0xff   : > { %v685_v31 = vpop.f32.mrb[9].mxu1  ;;  %1754 = vst [vmem:[%s2166_s6 + $0x98] sm:$0xff] %v1674_v22   ;;  %vm822_vm2 = vcmp.gt.f32.partialorder %v1850_v26, 0.0  ;;  %v886_v32 = vmul.f32 0.2, %v1850_v26  ;;  %v1819_v35 = vpop.f32.mrb[10].mxu0 }
 0x100   : > { %1737 = vst [vmem:[%s2166_s6 + $0x10] sm:$0xff] %v1589_v27   ;;  %1753 = vst [vmem:[%s2166_s6 + $0x90] sm:$0xff] %v1669_v28   ;;  %v852_v33 = vmul.f32 0.2, %v557_v30  ;;  %v884_v34 = vmul.f32 0.2, %v685_v31  ;;  %v918_v37 = vsel %vm790_vm1, %v1818_v25, %v854_v29 }
 0x101   : > { %v1851_v36 = vpop.f32.mrb[10].mxu1  ;;  %vm788_vm3 = vcmp.gt.f32.partialorder %v557_v30, 0.0  ;;  %vm791_vm4 = vcmp.gt.f32.partialorder %v1819_v35, 0.0  ;;  %v855_v38 = vmul.f32 0.2, %v1819_v35  ;;  %v560_v39 = vpop.f32.mrb[11].mxu0  ;;  %v950_v45 = vsel %vm822_vm2, %v1850_v26, %v886_v32 }
 0x102   : > { %v688_v40 = vpop.f32.mrb[11].mxu1  ;;  %vm820_vm5 = vcmp.gt.f32.partialorder %v685_v31, 0.0  ;;  %vm823_vm6 = vcmp.gt.f32.partialorder %v1851_v36, 0.0  ;;  %v887_v41 = vmul.f32 0.2, %v1851_v36  ;;  %vm789_vm7 = vcmp.gt.f32.partialorder %v560_v39, 0.0 }
 0x103   : > { %v919_v42 = vsel %vm791_vm4, %v1819_v35, %v855_v38  ;;  %v853_v43 = vmul.f32 0.2, %v560_v39  ;;  %vm821_vm8 = vcmp.gt.f32.partialorder %v688_v40, 0.0  ;;  %v885_v44 = vmul.f32 0.2, %v688_v40 }
 0x104   : > { %v916_v46 = vsel %vm788_vm3, %v557_v30, %v852_v33  ;;  %v1604_v47 = vpack.c.bf16 %v919_v42, %v918_v37  ;;  %v951_v48 = vsel %vm823_vm6, %v1851_v36, %v887_v41  ;;  %v948_v49 = vsel %vm820_vm5, %v685_v31, %v884_v34 }
 0x105   : > { %v1684_v50 = vpack.c.bf16 %v951_v48, %v950_v45  ;;  %v917_v51 = vsel %vm789_vm7, %v560_v39, %v853_v43  ;;  %v949_v52 = vsel %vm821_vm8, %v688_v40, %v885_v44  ;;  %v1822_v53 = vpop.f32.mrb[12].mxu0 }
 0x106   : > { %v1854_v54 = vpop.f32.mrb[12].mxu1  ;;  %1740 = vst [vmem:[%s2166_s6 + $0x28] sm:$0xff] %v1604_v47   ;;  %v1599_v55 = vpack.c.bf16 %v917_v51, %v916_v46  ;;  %v1679_v56 = vpack.c.bf16 %v949_v52, %v948_v49  ;;  %vm794_vm9 = vcmp.gt.f32.partialorder %v1822_v53, 0.0  ;;  %v858_v57 = vmul.f32 0.2, %v1822_v53  ;;  %v573_v58 = vpop.f32.mrb[13].mxu0 }
 0x107   : > { %v701_v59 = vpop.f32.mrb[13].mxu1  ;;  %1756 = vst [vmem:[%s2166_s6 + $0xa8] sm:$0xff] %v1684_v50   ;;  %vm826_vm10 = vcmp.gt.f32.partialorder %v1854_v54, 0.0  ;;  %v890_v60 = vmul.f32 0.2, %v1854_v54  ;;  %v1823_v63 = vpop.f32.mrb[14].mxu0 }
 0x108   : > { %1739 = vst [vmem:[%s2166_s6 + $0x20] sm:$0xff] %v1599_v55   ;;  %1755 = vst [vmem:[%s2166_s6 + $0xa0] sm:$0xff] %v1679_v56   ;;  %v856_v61 = vmul.f32 0.2, %v573_v58  ;;  %v888_v62 = vmul.f32 0.2, %v701_v59  ;;  %v922_v1 = vsel %vm794_vm9, %v1822_v53, %v858_v57 }
 0x109   : > { %v1855_v0 = vpop.f32.mrb[14].mxu1  ;;  %vm792_vm11 = vcmp.gt.f32.partialorder %v573_v58, 0.0  ;;  %vm795_vm12 = vcmp.gt.f32.partialorder %v1823_v63, 0.0  ;;  %v859_v2 = vmul.f32 0.2, %v1823_v63  ;;  %v576_v3 = vpop.f32.mrb[15].mxu0  ;;  %v954_v9 = vsel %vm826_vm10, %v1854_v54, %v890_v60 }
 0x10a   : > { %v704_v4 = vpop.f32.mrb[15].mxu1  ;;  %vm824_vm13 = vcmp.gt.f32.partialorder %v701_v59, 0.0  ;;  %vm827_vm14 = vcmp.gt.f32.partialorder %v1855_v0, 0.0  ;;  %v891_v5 = vmul.f32 0.2, %v1855_v0  ;;  %vm793_vm15 = vcmp.gt.f32.partialorder %v576_v3, 0.0 }
 0x10b   : > { %v923_v6 = vsel %vm795_vm12, %v1823_v63, %v859_v2  ;;  %v857_v7 = vmul.f32 0.2, %v576_v3  ;;  %vm825_vm0 = vcmp.gt.f32.partialorder %v704_v4, 0.0  ;;  %v889_v8 = vmul.f32 0.2, %v704_v4 }
 0x10c   : > { %v920_v10 = vsel %vm792_vm11, %v573_v58, %v856_v61  ;;  %v1614_v11 = vpack.c.bf16 %v923_v6, %v922_v1  ;;  %v955_v12 = vsel %vm827_vm14, %v1855_v0, %v891_v5  ;;  %v952_v13 = vsel %vm824_vm13, %v701_v59, %v888_v62 }
 0x10d   : > { %v1694_v14 = vpack.c.bf16 %v955_v12, %v954_v9  ;;  %v921_v15 = vsel %vm793_vm15, %v576_v3, %v857_v7  ;;  %v953_v16 = vsel %vm825_vm0, %v704_v4, %v889_v8  ;;  %v1826_v17 = vpop.f32.mrb[16].mxu0 }
 0x10e   : > { %v1858_v18 = vpop.f32.mrb[16].mxu1  ;;  %1742 = vst [vmem:[%s2166_s6 + $0x38] sm:$0xff] %v1614_v11   ;;  %v1609_v19 = vpack.c.bf16 %v921_v15, %v920_v10  ;;  %v1689_v20 = vpack.c.bf16 %v953_v16, %v952_v13  ;;  %vm798_vm1 = vcmp.gt.f32.partialorder %v1826_v17, 0.0  ;;  %v862_v21 = vmul.f32 0.2, %v1826_v17  ;;  %v589_v22 = vpop.f32.mrb[17].mxu0 }
 0x10f   : > { %v717_v23 = vpop.f32.mrb[17].mxu1  ;;  %1758 = vst [vmem:[%s2166_s6 + $0xb8] sm:$0xff] %v1694_v14   ;;  %vm830_vm2 = vcmp.gt.f32.partialorder %v1858_v18, 0.0  ;;  %v894_v24 = vmul.f32 0.2, %v1858_v18  ;;  %v1827_v27 = vpop.f32.mrb[18].mxu0 }
 0x110   : > { %1741 = vst [vmem:[%s2166_s6 + $0x30] sm:$0xff] %v1609_v19   ;;  %1757 = vst [vmem:[%s2166_s6 + $0xb0] sm:$0xff] %v1689_v20   ;;  %v860_v25 = vmul.f32 0.2, %v589_v22  ;;  %v892_v26 = vmul.f32 0.2, %v717_v23  ;;  %v926_v29 = vsel %vm798_vm1, %v1826_v17, %v862_v21 }
 0x111   : > { %v1859_v28 = vpop.f32.mrb[18].mxu1  ;;  %vm796_vm3 = vcmp.gt.f32.partialorder %v589_v22, 0.0  ;;  %vm799_vm4 = vcmp.gt.f32.partialorder %v1827_v27, 0.0  ;;  %v863_v30 = vmul.f32 0.2, %v1827_v27  ;;  %v592_v31 = vpop.f32.mrb[19].mxu0  ;;  %v958_v37 = vsel %vm830_vm2, %v1858_v18, %v894_v24 }
 0x112   : > { %v720_v32 = vpop.f32.mrb[19].mxu1  ;;  %vm828_vm5 = vcmp.gt.f32.partialorder %v717_v23, 0.0  ;;  %vm831_vm6 = vcmp.gt.f32.partialorder %v1859_v28, 0.0  ;;  %v895_v33 = vmul.f32 0.2, %v1859_v28  ;;  %vm797_vm7 = vcmp.gt.f32.partialorder %v592_v31, 0.0 }
 0x113   : > { %v927_v34 = vsel %vm799_vm4, %v1827_v27, %v863_v30  ;;  %v861_v35 = vmul.f32 0.2, %v592_v31  ;;  %vm829_vm8 = vcmp.gt.f32.partialorder %v720_v32, 0.0  ;;  %v893_v36 = vmul.f32 0.2, %v720_v32 }
 0x114   : > { %v924_v38 = vsel %vm796_vm3, %v589_v22, %v860_v25  ;;  %v1624_v39 = vpack.c.bf16 %v927_v34, %v926_v29  ;;  %v959_v40 = vsel %vm831_vm6, %v1859_v28, %v895_v33  ;;  %v956_v41 = vsel %vm828_vm5, %v717_v23, %v892_v26 }
 0x115   : > { %v1704_v42 = vpack.c.bf16 %v959_v40, %v958_v37  ;;  %v925_v43 = vsel %vm797_vm7, %v592_v31, %v861_v35  ;;  %v957_v44 = vsel %vm829_vm8, %v720_v32, %v893_v36  ;;  %v1830_v45 = vpop.f32.mrb[20].mxu0 }
 0x116   : > { %v1862_v46 = vpop.f32.mrb[20].mxu1  ;;  %1744 = vst [vmem:[%s2166_s6 + $0x48] sm:$0xff] %v1624_v39   ;;  %v1619_v47 = vpack.c.bf16 %v925_v43, %v924_v38  ;;  %v1699_v48 = vpack.c.bf16 %v957_v44, %v956_v41  ;;  %vm802_vm9 = vcmp.gt.f32.partialorder %v1830_v45, 0.0  ;;  %v866_v49 = vmul.f32 0.2, %v1830_v45  ;;  %v605_v50 = vpop.f32.mrb[21].mxu0 }
 0x117   : > { %v733_v51 = vpop.f32.mrb[21].mxu1  ;;  %1760 = vst [vmem:[%s2166_s6 + $0xc8] sm:$0xff] %v1704_v42   ;;  %vm834_vm10 = vcmp.gt.f32.partialorder %v1862_v46, 0.0  ;;  %v898_v52 = vmul.f32 0.2, %v1862_v46  ;;  %v1831_v55 = vpop.f32.mrb[22].mxu0 }
 0x118   : > { %1743 = vst [vmem:[%s2166_s6 + $0x40] sm:$0xff] %v1619_v47   ;;  %1759 = vst [vmem:[%s2166_s6 + $0xc0] sm:$0xff] %v1699_v48   ;;  %v864_v53 = vmul.f32 0.2, %v605_v50  ;;  %v896_v54 = vmul.f32 0.2, %v733_v51  ;;  %v930_v57 = vsel %vm802_vm9, %v1830_v45, %v866_v49 }
 0x119   : > { %v1863_v56 = vpop.f32.mrb[22].mxu1  ;;  %vm800_vm11 = vcmp.gt.f32.partialorder %v605_v50, 0.0  ;;  %vm803_vm12 = vcmp.gt.f32.partialorder %v1831_v55, 0.0  ;;  %v867_v58 = vmul.f32 0.2, %v1831_v55  ;;  %v608_v59 = vpop.f32.mrb[23].mxu0  ;;  %v962_v1 = vsel %vm834_vm10, %v1862_v46, %v898_v52 }
 0x11a   : > { %v736_v60 = vpop.f32.mrb[23].mxu1  ;;  %vm832_vm13 = vcmp.gt.f32.partialorder %v733_v51, 0.0  ;;  %vm835_vm14 = vcmp.gt.f32.partialorder %v1863_v56, 0.0  ;;  %v899_v61 = vmul.f32 0.2, %v1863_v56  ;;  %vm801_vm15 = vcmp.gt.f32.partialorder %v608_v59, 0.0 }
 0x11b   : > { %v931_v62 = vsel %vm803_vm12, %v1831_v55, %v867_v58  ;;  %v865_v63 = vmul.f32 0.2, %v608_v59  ;;  %vm833_vm0 = vcmp.gt.f32.partialorder %v736_v60, 0.0  ;;  %v897_v0 = vmul.f32 0.2, %v736_v60 }
 0x11c   : > { %v928_v2 = vsel %vm800_vm11, %v605_v50, %v864_v53  ;;  %v1634_v3 = vpack.c.bf16 %v931_v62, %v930_v57  ;;  %v963_v4 = vsel %vm835_vm14, %v1863_v56, %v899_v61  ;;  %v960_v5 = vsel %vm832_vm13, %v733_v51, %v896_v54 }
 0x11d   : > { %v1714_v6 = vpack.c.bf16 %v963_v4, %v962_v1  ;;  %v929_v7 = vsel %vm801_vm15, %v608_v59, %v865_v63  ;;  %v961_v8 = vsel %vm833_vm0, %v736_v60, %v897_v0  ;;  %v1834_v9 = vpop.f32.mrb[24].mxu0 }
 0x11e   : > { %v1866_v10 = vpop.f32.mrb[24].mxu1  ;;  %1746 = vst [vmem:[%s2166_s6 + $0x58] sm:$0xff] %v1634_v3   ;;  %v1629_v11 = vpack.c.bf16 %v929_v7, %v928_v2  ;;  %v1709_v12 = vpack.c.bf16 %v961_v8, %v960_v5  ;;  %vm806_vm1 = vcmp.gt.f32.partialorder %v1834_v9, 0.0  ;;  %v870_v13 = vmul.f32 0.2, %v1834_v9  ;;  %v621_v14 = vpop.f32.mrb[25].mxu0 }
 0x11f   : > { %v749_v15 = vpop.f32.mrb[25].mxu1  ;;  %1762 = vst [vmem:[%s2166_s6 + $0xd8] sm:$0xff] %v1714_v6   ;;  %vm838_vm2 = vcmp.gt.f32.partialorder %v1866_v10, 0.0  ;;  %v902_v16 = vmul.f32 0.2, %v1866_v10  ;;  %v1835_v19 = vpop.f32.mrb[26].mxu0 }
 0x120   : > { %1745 = vst [vmem:[%s2166_s6 + $0x50] sm:$0xff] %v1629_v11   ;;  %1761 = vst [vmem:[%s2166_s6 + $0xd0] sm:$0xff] %v1709_v12   ;;  %v868_v17 = vmul.f32 0.2, %v621_v14  ;;  %v900_v18 = vmul.f32 0.2, %v749_v15  ;;  %v934_v21 = vsel %vm806_vm1, %v1834_v9, %v870_v13 }
 0x121   : > { %v1867_v20 = vpop.f32.mrb[26].mxu1  ;;  %vm804_vm3 = vcmp.gt.f32.partialorder %v621_v14, 0.0  ;;  %vm807_vm4 = vcmp.gt.f32.partialorder %v1835_v19, 0.0  ;;  %v871_v22 = vmul.f32 0.2, %v1835_v19  ;;  %v624_v23 = vpop.f32.mrb[27].mxu0  ;;  %v966_v29 = vsel %vm838_vm2, %v1866_v10, %v902_v16 }
 0x122   : > { %v752_v24 = vpop.f32.mrb[27].mxu1  ;;  %vm836_vm5 = vcmp.gt.f32.partialorder %v749_v15, 0.0  ;;  %vm839_vm6 = vcmp.gt.f32.partialorder %v1867_v20, 0.0  ;;  %v903_v25 = vmul.f32 0.2, %v1867_v20  ;;  %vm805_vm7 = vcmp.gt.f32.partialorder %v624_v23, 0.0 }
 0x123   : > { %v935_v26 = vsel %vm807_vm4, %v1835_v19, %v871_v22  ;;  %v869_v27 = vmul.f32 0.2, %v624_v23  ;;  %vm837_vm8 = vcmp.gt.f32.partialorder %v752_v24, 0.0  ;;  %v901_v28 = vmul.f32 0.2, %v752_v24 }
 0x124   : > { %v932_v30 = vsel %vm804_vm3, %v621_v14, %v868_v17  ;;  %v1644_v31 = vpack.c.bf16 %v935_v26, %v934_v21  ;;  %v967_v32 = vsel %vm839_vm6, %v1867_v20, %v903_v25  ;;  %v964_v33 = vsel %vm836_vm5, %v749_v15, %v900_v18 }
 0x125   : > { %v1724_v34 = vpack.c.bf16 %v967_v32, %v966_v29  ;;  %v933_v35 = vsel %vm805_vm7, %v624_v23, %v869_v27  ;;  %v965_v36 = vsel %vm837_vm8, %v752_v24, %v901_v28  ;;  %v1838_v37 = vpop.f32.mrb[28].mxu0 }
 0x126   : > { %v1870_v38 = vpop.f32.mrb[28].mxu1  ;;  %1748 = vst [vmem:[%s2166_s6 + $0x68] sm:$0xff] %v1644_v31   ;;  %v1639_v39 = vpack.c.bf16 %v933_v35, %v932_v30  ;;  %v1719_v40 = vpack.c.bf16 %v965_v36, %v964_v33  ;;  %vm810_vm9 = vcmp.gt.f32.partialorder %v1838_v37, 0.0  ;;  %v874_v41 = vmul.f32 0.2, %v1838_v37  ;;  %v637_v42 = vpop.f32.mrb[29].mxu0 }
 0x127   : > { %v765_v43 = vpop.f32.mrb[29].mxu1  ;;  %1764 = vst [vmem:[%s2166_s6 + $0xe8] sm:$0xff] %v1724_v34   ;;  %vm842_vm10 = vcmp.gt.f32.partialorder %v1870_v38, 0.0  ;;  %v906_v44 = vmul.f32 0.2, %v1870_v38  ;;  %v1839_v47 = vpop.f32.mrb[30].mxu0 }
 0x128   : > { %1747 = vst [vmem:[%s2166_s6 + $0x60] sm:$0xff] %v1639_v39   ;;  %1763 = vst [vmem:[%s2166_s6 + $0xe0] sm:$0xff] %v1719_v40   ;;  %v872_v45 = vmul.f32 0.2, %v637_v42  ;;  %v904_v46 = vmul.f32 0.2, %v765_v43  ;;  %v938_v49 = vsel %vm810_vm9, %v1838_v37, %v874_v41 }
 0x129   : > { %v1871_v48 = vpop.f32.mrb[30].mxu1  ;;  %vm808_vm11 = vcmp.gt.f32.partialorder %v637_v42, 0.0  ;;  %vm811_vm12 = vcmp.gt.f32.partialorder %v1839_v47, 0.0  ;;  %v875_v50 = vmul.f32 0.2, %v1839_v47  ;;  %v640_v51 = vpop.f32.mrb[31].mxu0  ;;  %v970_v57 = vsel %vm842_vm10, %v1870_v38, %v906_v44 }
 0x12a   : > { %v768_v52 = vpop.f32.mrb[31].mxu1  ;;  %vm840_vm13 = vcmp.gt.f32.partialorder %v765_v43, 0.0  ;;  %vm843_vm14 = vcmp.gt.f32.partialorder %v1871_v48, 0.0  ;;  %v907_v53 = vmul.f32 0.2, %v1871_v48  ;;  %vm809_vm15 = vcmp.gt.f32.partialorder %v640_v51, 0.0 }
 0x12b   : > { %v939_v54 = vsel %vm811_vm12, %v1839_v47, %v875_v50  ;;  %v873_v55 = vmul.f32 0.2, %v640_v51  ;;  %vm841_vm0 = vcmp.gt.f32.partialorder %v768_v52, 0.0  ;;  %v905_v56 = vmul.f32 0.2, %v768_v52 }
 0x12c   : > { %v936_v58 = vsel %vm808_vm11, %v637_v42, %v872_v45  ;;  %v1654_v59 = vpack.c.bf16 %v939_v54, %v938_v49  ;;  %v971_v60 = vsel %vm843_vm14, %v1871_v48, %v907_v53  ;;  %v968_v61 = vsel %vm840_vm13, %v765_v43, %v904_v46 }
 0x12d   : > { %v1734_v62 = vpack.c.bf16 %v971_v60, %v970_v57  ;;  %v937_v63 = vsel %vm809_vm15, %v640_v51, %v873_v55  ;;  %v969_v0 = vsel %vm841_vm0, %v768_v52, %v905_v56 }
 0x12e   : > { %1750 = vst [vmem:[%s2166_s6 + $0x78] sm:$0xff] %v1654_v59   ;;  %v1649_v1 = vpack.c.bf16 %v937_v63, %v936_v58  ;;  %v1729_v2 = vpack.c.bf16 %v969_v0, %v968_v61 }
 0x12f   : > { %1766 = vst [vmem:[%s2166_s6 + $0xf8] sm:$0xff] %v1734_v62  }
 0x130   : > { %1749 = vst [vmem:[%s2166_s6 + $0x70] sm:$0xff] %v1649_v1   ;;  %1765 = vst [vmem:[%s2166_s6 + $0xf0] sm:$0xff] %v1729_v2  }
 0x131   : > { %1967 = shalt.err (!%p1964_p3)
}
 0x132   : > { %s1968_s25 = scalar_lea.hbm %s2210_s17, 4096  ;;  %s1972_s28 = scalar_lea.hbm %s2263_s2, 16384 }
 0x133   : > { %p1969_p4 = scmp.ne.s32.totalorder %s2210_s17, %s1968_s25  ;;  %p1973_p9 = scmp.lt.u32.totalorder %s2210_s17, %s2263_s2 }
 0x134   : > { %p1974_p10 = scmp.lt.u32.totalorder %s1972_s28, %s1968_s25  ;;  %p1976_p12 = scmp.lt.u32.totalorder %s1968_s25, %s2210_s17 }
 0x135   : > { %p1970_p7 = pnand %p1969_p4, %p2074_p5 }
 0x136   : > { %p1975_p11 = por %p1974_p10, %p1973_p9 }
 0x137   : > { %p1971_p8 = pneg %p1970_p7 }
 0x138   : > { %p1977_p13 = por %p1976_p12, %p1975_p11 }
 0x13a   : > { %p1978_p0 = pnand %p1977_p13, %p1971_p8 }
 0x13c   : > { %1981 = shalt.err (!%p1978_p0)
}
 0x13d   : > { %s2019_s3 = smov 64   ;;  %s2020_s4 = smov 4  }
 0x13e   : > { %1878 = dma.vmem_to_hbm [thread:$0]  (%p2074_p5), %s2212_s8, 4096, %s2210_s17, %s2220_s21, %s2019_s3, %s2019_s3, %s2020_s4  }
 0x13f PF: > { %p1884_p1 = scmp.ge.s32.totalorder %s2016_s12, 2  ;;  %s1321_s5 = sand.u32 1, %s2004_s9  }
 0x140   : > { %s1322_s6 = scalar_lea.sflag [#allocation3], %s1321_s5 }
 0x141   : > { %p1881_p2 = pnand %p1884_p1, %p2078_p6 }
 0x143   : > { %1999 = dma.done.wait (!%p1881_p2), %s1322_s6, 4096  }
 0x144   : > { %2001 = vsyncadd (!%p1881_p2), %s1322_s6, 4294963200  ;;  %p12_p3 = scmp.ge.s32.totalorder %s2061_s15, 6   ;;  %s2266_s9 = smov %s2008_s10 }
 0x145   : > { %s2267_s10 = smov %s2012_s11  ;;  %s2268_s11 = smov %s2072_s18 }
 0x146   : > { %s2269_s12 = smov %s2061_s15  ;;  %14 = sbr.rel (!%p12_p3) target bundleno = 3 (0x3), region = 63 }
 0x14d   :  { %1327 = vsyncpa [#allocation3], 1 }
 0x14e   :  { %1329 = vsyncpa [#allocation3 + $0x1], 1 }

</bundles_post_ra>
